<compile_context>
chip_gen: v6e
topology: v6e:2x2x1
jax: 0.10.0
libtpu: 0.0.40
codegen_flags: <defaults>
</compile_context>

<pallas_src>
import functools
import inspect

import jax
import jax.numpy as jnp
from jax.experimental import pallas as pl
from jax.experimental.pallas import tpu as pltpu


def _round_up(x, m):
    return (x + m - 1) // m * m


# Single-buffer resident blocks when the installed Pallas supports pipeline_mode.
_HAS_PIPELINE_MODE = (
    hasattr(pl, "Buffered")
    and "pipeline_mode" in inspect.signature(pl.BlockSpec).parameters
)


def _resident_spec(shape):
    """BlockSpec for an operand whose block never changes across the grid."""
    index_map = lambda i: (0,) * len(shape)
    if _HAS_PIPELINE_MODE:
        return pl.BlockSpec(shape, index_map, pipeline_mode=pl.Buffered(1))
    return pl.BlockSpec(shape, index_map)


def _mlp_kernel(x_ref, w1_ref, b1_ref, w2_ref, b2_ref, o_ref):
    # fc1: [tm, Cin] @ [Cin, H]  -> f32 accumulator on the MXU
    h = jnp.dot(x_ref[...], w1_ref[...], preferred_element_type=jnp.float32)
    # bias + ReLU on the f32 accumulator (works for bf16 inputs; avoids bf16 VPU math on v5e)
    h = jnp.maximum(h + b1_ref[...].astype(jnp.float32), 0.0)
    # Dropout with p=0.0 is the identity -> nothing to do.
    # fc2: cast activation to weight dtype only at the MXU input, f32 accumulate.
    o = jnp.dot(h.astype(w2_ref.dtype), w2_ref[...], preferred_element_type=jnp.float32)
    o = o + b2_ref[...].astype(jnp.float32)
    # TODO(synk): with C_out < 128 the store is lane-sparse (masked vst); if the consumer's
    # layout permits, present a lane-dense (m*C_out/128, 128) output slab or fuse the consumer.
    o_ref[...] = o.astype(o_ref.dtype)


def _per_row_vmem_bytes(c_in, hidden, c_out, xb, ob):
    # x tile (double-buffered) + out tile (double-buffered) + f32 fc1 activation scratch.
    return 2 * c_in * xb + 2 * c_out * ob + hidden * 4


def _resident_vmem_bytes(c_in, hidden, c_out, w1b, w2b):
    return c_in * hidden * w1b + hidden * c_out * w2b + (hidden + c_out) * 4


@functools.partial(jax.jit, static_argnames=("tm",))
def mlp_pallas(x, w1, b1, w2, b2, *, tm=512):
    """Fused MLP forward (fc1 -> ReLU -> fc2), dropout p=0.

    x : [..., C_in]        (any leading dims)
    w1: [C_in, hidden]     b1: [hidden]
    w2: [hidden, C_out]    b2: [C_out]
    returns [..., C_out]
    """
    orig_shape = x.shape
    c_in = orig_shape[-1]
    hidden = w1.shape[1]
    c_out = w2.shape[1]

    x2d = x.reshape(-1, c_in)
    m = x2d.shape[0]

    xb = x2d.dtype.itemsize
    ob = x.dtype.itemsize
    w1b = w1.dtype.itemsize
    w2b = w2.dtype.itemsize

    # Effective M-tile: multiple of 8 (f32 sublane), no bigger than the (padded) token count,
    # and small enough that the whole working set stays under a conservative VMEM budget
    # (v7x has only 64 MiB physical VMEM; keep ample headroom for compiler scratch).
    vmem_budget = 40 * 1024 * 1024
    per_row = _per_row_vmem_bytes(c_in, hidden, c_out, xb, ob)
    resident = _resident_vmem_bytes(c_in, hidden, c_out, w1b, w2b)
    tm_cap = max(8, (vmem_budget - resident) // max(per_row, 1))
    tm_eff = min(tm, _round_up(m, 8), _round_up(tm_cap, 8) if tm_cap >= 8 else 8)
    tm_eff = max(8, tm_eff // 8 * 8)

    # Pad tokens to a tile multiple; padded rows are computed and sliced away (finite values).
    m_pad = _round_up(m, tm_eff)
    if m_pad != m:
        x2d = jnp.pad(x2d, ((0, m_pad - m), (0, 0)))
    grid_m = m_pad // tm_eff

    b1_2d = b1.reshape(1, hidden)
    b2_2d = b2.reshape(1, c_out)

    vmem_est = resident + tm_eff * per_row
    # Floor above the v5e 16 MiB scoped default; cap below v7x physical VMEM headroom.
    vmem_limit = int(min(max(int(vmem_est * 1.5), 32 * 1024 * 1024), 56 * 1024 * 1024))

    cost = pl.CostEstimate(
        flops=2 * m_pad * (c_in * hidden + hidden * c_out),
        transcendentals=0,
        bytes_accessed=(
            m_pad * c_in * xb
            + m_pad * c_out * ob
            + c_in * hidden * w1b
            + hidden * c_out * w2b
            + (hidden + c_out) * 4
        ),
    )

    out = pl.pallas_call(
        _mlp_kernel,
        out_shape=jax.ShapeDtypeStruct((m_pad, c_out), x.dtype),
        grid_spec=pltpu.PrefetchScalarGridSpec(
            num_scalar_prefetch=0,
            grid=(grid_m,),
            in_specs=[
                pl.BlockSpec((tm_eff, c_in), lambda i: (i, 0)),  # x tile (pipelined)
                _resident_spec((c_in, hidden)),                  # W1 (resident, single-buffered)
                _resident_spec((1, hidden)),                     # b1
                _resident_spec((hidden, c_out)),                 # W2
                _resident_spec((1, c_out)),                      # b2
            ],
            out_specs=pl.BlockSpec((tm_eff, c_out), lambda i: (i, 0)),
        ),
        compiler_params=pltpu.CompilerParams(
            dimension_semantics=("parallel",),   # lets v7x shard grid steps across its 2 TCs
            vmem_limit_bytes=vmem_limit,
        ),
        cost_estimate=cost,
    )(x2d, w1, b1_2d, w2, b2_2d)

    out = out[:m]
    return out.reshape(*orig_shape[:-1], c_out)


def mlp_reference(x, w1, b1, w2, b2):
    h = jnp.maximum(x @ w1 + b1, 0.0)
    return h @ w2 + b2


if __name__ == "__main__":
    # Module config (synthetic, deterministic init):
    #   in_features=32, hidden_features=64, out_features=32, act=ReLU, drop=0.0
    in_features, hidden_features, out_features = 32, 64, 32
    batch, seq = 2, 8  # x: [2, 8, 32]

    key = jax.random.PRNGKey(0)
    kx, k1, k2, k3, k4 = jax.random.split(key, 5)

    x = jax.random.normal(kx, (batch, seq, in_features), dtype=jnp.float32)

    # nn.Linear-shaped params, stored pre-transposed as [C_in, C_out] for the kernel.
    bound1 = 1.0 / jnp.sqrt(in_features)
    w1 = jax.random.uniform(k1, (in_features, hidden_features),
                            minval=-bound1, maxval=bound1, dtype=jnp.float32)
    b1 = jax.random.uniform(k2, (hidden_features,),
                            minval=-bound1, maxval=bound1, dtype=jnp.float32)
    bound2 = 1.0 / jnp.sqrt(hidden_features)
    w2 = jax.random.uniform(k3, (hidden_features, out_features),
                            minval=-bound2, maxval=bound2, dtype=jnp.float32)
    b2 = jax.random.uniform(k4, (out_features,),
                            minval=-bound2, maxval=bound2, dtype=jnp.float32)

    # Main check (tm default 512 clamps to the tiny token count automatically).
    out = jax.block_until_ready(mlp_pallas(x, w1, b1, w2, b2))
    ref = mlp_reference(x, w1, b1, w2, b2)
    assert out.shape == (batch, seq, out_features)
    assert jnp.allclose(out, ref, atol=1e-5, rtol=1e-5), "mismatch vs reference"

    # Also exercise the padded-tail path: token count (3*7=21) not a multiple of the tile.
    x_odd = jax.random.normal(k1, (3, 7, in_features), dtype=jnp.float32)
    out_odd = jax.block_until_ready(mlp_pallas(x_odd, w1, b1, w2, b2, tm=8))
    ref_odd = mlp_reference(x_odd, w1, b1, w2, b2)
    assert out_odd.shape == (3, 7, out_features)
    assert jnp.allclose(out_odd, ref_odd, atol=1e-5, rtol=1e-5), "mismatch vs reference (tail)"

    print("KERNEL_OK")
</pallas_src>

<mosaic_0001>
module attributes {stable_mosaic.version = 11 : i64} {
  func.func @_mlp_kernel(%arg0: i32, %arg1: memref<16x32xf32, #tpu.memory_space<vmem>>, %arg2: memref<32x64xf32, #tpu.memory_space<vmem>>, %arg3: memref<1x64xf32, #tpu.memory_space<vmem>>, %arg4: memref<64x32xf32, #tpu.memory_space<vmem>>, %arg5: memref<1x32xf32, #tpu.memory_space<vmem>>, %arg6: memref<16x32xf32, #tpu.memory_space<vmem>>) attributes {dimension_semantics = [#tpu.dimension_semantics<parallel>], iteration_bounds = array<i64: 1>, scalar_prefetch = 0 : i64, scratch_operands = 0 : i64, tpu.core_type = #tpu.core_type<tc>, window_params = [{transform_indices = @transform_0, window_bounds = array<i64: 16, 32>}, {pipeline_mode = #tpu.pipeline_mode<synchronous>, transform_indices = @transform_1, window_bounds = array<i64: 32, 64>}, {pipeline_mode = #tpu.pipeline_mode<synchronous>, transform_indices = @transform_2, window_bounds = array<i64: 1, 64>}, {pipeline_mode = #tpu.pipeline_mode<synchronous>, transform_indices = @transform_3, window_bounds = array<i64: 64, 32>}, {pipeline_mode = #tpu.pipeline_mode<synchronous>, transform_indices = @transform_4, window_bounds = array<i64: 1, 32>}, {transform_indices = @transform_5, window_bounds = array<i64: 16, 32>}]} {
    %c0 = arith.constant 0 : index
    %c0_0 = arith.constant 0 : index
    %0 = vector.load %arg1[%c0, %c0_0] : memref<16x32xf32, #tpu.memory_space<vmem>>, vector<16x32xf32>
    %c0_1 = arith.constant 0 : index
    %c0_2 = arith.constant 0 : index
    %1 = vector.load %arg2[%c0_1, %c0_2] : memref<32x64xf32, #tpu.memory_space<vmem>>, vector<32x64xf32>
    %cst = arith.constant dense<0.000000e+00> : vector<16x64xf32>
    %2 = tpu.matmul %0, %1, %cst {dimension_numbers = #tpu.dot_dimension_numbers<[1], [0], [0], [1], [0, 0, 1, 1], [], []>} : vector<16x32xf32>, vector<32x64xf32>, vector<16x64xf32> -> vector<16x64xf32>
    %c0_3 = arith.constant 0 : index
    %c0_4 = arith.constant 0 : index
    %3 = vector.load %arg3[%c0_3, %c0_4] : memref<1x64xf32, #tpu.memory_space<vmem>>, vector<1x64xf32>
    %4 = vector.broadcast %3 : vector<1x64xf32> to vector<16x64xf32>
    %5 = arith.addf %2, %4 : vector<16x64xf32>
    %cst_5 = arith.constant 0.000000e+00 : f32
    %6 = vector.broadcast %cst_5 : f32 to vector<16x64xf32>
    %7 = arith.maximumf %5, %6 : vector<16x64xf32>
    %c0_6 = arith.constant 0 : index
    %c0_7 = arith.constant 0 : index
    %8 = vector.load %arg4[%c0_6, %c0_7] : memref<64x32xf32, #tpu.memory_space<vmem>>, vector<64x32xf32>
    %cst_8 = arith.constant dense<0.000000e+00> : vector<16x32xf32>
    %9 = tpu.matmul %7, %8, %cst_8 {dimension_numbers = #tpu.dot_dimension_numbers<[1], [0], [0], [1], [0, 0, 1, 1], [], []>} : vector<16x64xf32>, vector<64x32xf32>, vector<16x32xf32> -> vector<16x32xf32>
    %c0_9 = arith.constant 0 : index
    %c0_10 = arith.constant 0 : index
    %10 = vector.load %arg5[%c0_9, %c0_10] : memref<1x32xf32, #tpu.memory_space<vmem>>, vector<1x32xf32>
    %11 = vector.broadcast %10 : vector<1x32xf32> to vector<16x32xf32>
    %12 = arith.addf %9, %11 : vector<16x32xf32>
    %c0_11 = arith.constant 0 : index
    %c0_12 = arith.constant 0 : index
    %13 = vector.load %arg6[%c0_11, %c0_12] : memref<16x32xf32, #tpu.memory_space<vmem>>, vector<16x32xf32>
    tpu.vector_store %arg6[%c0_11, %c0_12], %12 {strides = array<i32>} : memref<16x32xf32, #tpu.memory_space<vmem>>, vector<16x32xf32>,
    return
  }
  func.func @transform_0(%arg0: i32) -> (i32, i32) {
    %c0_i32 = arith.constant 0 : i32
    %c0_i32_0 = arith.constant 0 : i32
    return %arg0, %c0_i32 : i32, i32
  }
  func.func @transform_1(%arg0: i32) -> (i32, i32) {
    %c0_i32 = arith.constant 0 : i32
    %c0_i32_0 = arith.constant 0 : i32
    %c0_i32_1 = arith.constant 0 : i32
    return %c0_i32, %c0_i32_0 : i32, i32
  }
  func.func @transform_2(%arg0: i32) -> (i32, i32) {
    %c0_i32 = arith.constant 0 : i32
    %c0_i32_0 = arith.constant 0 : i32
    %c0_i32_1 = arith.constant 0 : i32
    return %c0_i32, %c0_i32_0 : i32, i32
  }
  func.func @transform_3(%arg0: i32) -> (i32, i32) {
    %c0_i32 = arith.constant 0 : i32
    %c0_i32_0 = arith.constant 0 : i32
    %c0_i32_1 = arith.constant 0 : i32
    return %c0_i32, %c0_i32_0 : i32, i32
  }
  func.func @transform_4(%arg0: i32) -> (i32, i32) {
    %c0_i32 = arith.constant 0 : i32
    %c0_i32_0 = arith.constant 0 : i32
    %c0_i32_1 = arith.constant 0 : i32
    return %c0_i32, %c0_i32_0 : i32, i32
  }
  func.func @transform_5(%arg0: i32) -> (i32, i32) {
    %c0_i32 = arith.constant 0 : i32
    %c0_i32_0 = arith.constant 0 : i32
    return %arg0, %c0_i32 : i32, i32
  }
}

</mosaic_0001>

<bundles_post_ra>
// kernel: mlp_pallas.1
= control target key start
LH: loop header
LB: loop body
LE: loop exit
PB: predicated region body
PF: predicated region fallthrough
CT: control target
= control target key end

     0   :  { %vm34_vm0 = vcmask 261120   ;;  %s398_s0 = inlined_call_operand.vmem [shape: f32[16,32], index: 0, kind: input, shape index: {}]   ;;  %s399_s1 = inlined_call_operand.vmem [shape: f32[32,64], index: 1, kind: input, shape index: {}]   ;;  %s400_s2 = inlined_call_operand.vmem [shape: f32[1,64], index: 2, kind: input, shape index: {}]   ;;  %s401_s3 = inlined_call_operand.vmem [shape: f32[64,32], index: 3, kind: input, shape index: {}]   ;;  %s402_s4 = inlined_call_operand.vmem [shape: f32[1,32], index: 4, kind: input, shape index: {}]   ;;  %s403_s5 = inlined_call_operand.hbm [shape: f32[16,32], index: 5, kind: output, shape index: {}]  }
   0x1   :  { %v26_v0 = vld [vmem:[%s399_s1 + $0x18] sm:$0xff]  ;;  %v25_v1 = vld [vmem:[%s399_s1 + $0x10] sm:$0xff]  ;;  %v21_v2 = vld [vmem:[%s398_s0] sm:$0xff] }
   0x2   :  { %255 = vmatprep.subr.mxu0 %v26_v0  ;;  %v24_v3 = vld [vmem:[%s399_s1 + $0x8] sm:$0xff]  ;;  %263 = vmatprep.mubr.msk.f32.mxu0 %vm34_vm0, %v21_v2  ;;  %v125_v4 = vld [vmem:[%s401_s3 + $0x38] sm:$0xff]  ;;  %v124_v5 = vld [vmem:[%s401_s3 + $0x30] sm:$0xff] }
   0x3   :  { %256 = vmatpush3.msra.mxu0 %v26_v0  ;;  %266 = vmatprep.subr.mxu1 %v125_v4 }
   0x4   :  { %257 = vmatprep.subr.mxu0 %v25_v1 }
   0x5   :  { %10 = vsyncpa [#allocation3], 0  ;;  %258 = vmatpush3.msra.mxu0 %v25_v1  ;;  %v23_v6 = vld [vmem:[%s399_s1] sm:$0xff]  ;;  %267 = vmatpush3.msra.mxu1 %v125_v4  ;;  %v123_v7 = vld [vmem:[%s401_s3 + $0x28] sm:$0xff]  ;;  %vm133_vm1 = vcmask 523264  }
   0x6   :  { %259 = vmatprep.subr.mxu0 %v24_v3  ;;  %268 = vmatprep.subr.mxu1 %v124_v5  ;;  %v22_v8 = vld [vmem:[%s398_s0 + $0x8] sm:$0xff]  ;;  %v122_v9 = vld [vmem:[%s401_s3 + $0x20] sm:$0xff]  ;;  %v121_v10 = vld [vmem:[%s401_s3 + $0x18] sm:$0xff] }
   0x7   :  { %260 = vmatpush3.msra.mxu0 %v24_v3  ;;  %269 = vmatpush3.msra.mxu1 %v124_v5  ;;  %v120_v11 = vld [vmem:[%s401_s3 + $0x10] sm:$0xff]  ;;  %v119_v12 = vld [vmem:[%s401_s3 + $0x8] sm:$0xff]  ;;  %v118_v13 = vld [vmem:[%s401_s3] sm:$0xff]  ;;  %s310_s3 = smov [#allocation2]  }
   0x8   :  { %261 = vmatprep.subr.mxu0 %v23_v6  ;;  %270 = vmatprep.subr.mxu1 %v123_v7  ;;  %v233_v14 = vld [vmem:[%s400_s2] ss:$0 sm:$0xff]  ;;  %s222_s23 = sshll.u32 %s310_s3, 4  ;;  %s223_s23 = int_to_ptr.vmem [resolvable:$true] %s222_s23 }
   0x9   :  { %262 = vmatpush3.msra.mxu0 %v23_v6  ;;  %271 = vmatpush3.msra.mxu1 %v123_v7  ;;  %v236_v21 = vld [vmem:[%s402_s4] ss:$0 sm:$0xff]  ;;  %s288_s2 = scalar_lea.vmem %s223_s23, 256  ;;  %p293_p1 = scmp.lt.s32.totalorder %s223_s23, %s223_s23 }
   0xa   :  { %264 = vmatmul.mubr.msk.f32.vlgmr.msra.gmra.mxu0 %vm34_vm0, %v22_v8  ;;  %272 = vmatprep.subr.mxu1 %v122_v9  ;;  %p289_p0 = scmp.ne.s32.totalorder %s223_s23, %s288_s2  ;;  %p294_p2 = scmp.lt.s32.totalorder %s288_s2, %s288_s2 }
   0xb   :  { %273 = vmatpush3.msra.mxu1 %v122_v9 }
   0xc   :  { %274 = vmatprep.subr.mxu1 %v121_v10  ;;  %p295_p3 = por %p294_p2, %p293_p1 }
   0xd   :  { %275 = vmatpush3.msra.mxu1 %v121_v10 }
   0xe   :  { %276 = vmatprep.subr.mxu1 %v120_v11  ;;  %p296_p4 = pnand %p295_p3, %p289_p0 }
   0xf   :  { %277 = vmatpush3.msra.mxu1 %v120_v11 }
  0x10   :  { %278 = vmatprep.subr.mxu1 %v119_v12 }
  0x11   :  { %279 = vmatpush3.msra.mxu1 %v119_v12 }
  0x12   :  { %280 = vmatprep.subr.mxu1 %v118_v13 }
  0x13   :  { %281 = vmatpush3.msra.mxu1 %v118_v13 }
  0xca   :  { %v265_v15 = vpop.f32.mrf.mxu0 }
  0xcb   :  { %v113_v16 = vadd.f32 %v265_v15, %v233_v14 }
  0xcc   :  { %v107_v17 = vpop.f32.mrf.mxu0 }
  0xcd   :  { %v108_v18 = vadd.f32 %v233_v14, %v107_v17  ;;  %v117_v20 = vmax.f32 %v113_v16, 0.0 }
  0xcf   :  { %v116_v19 = vmax.f32 %v108_v18, 0.0 }
  0xd1   :  { %282 = vmatprep.mubr.msk.f32.mxu1 %vm133_vm1, %v116_v19 }
  0xd2   :  { %283 = vmatmul.mubr.msk.f32.vlgmr.msra.gmra.mxu1 %vm133_vm1, %v117_v20 }
 0x192   :  { %v284_v22 = vpop.f32.mrf.mxu1 }
 0x193   :  { %v212_v23 = vadd.f32 %v284_v22, %v236_v21 }
 0x194   :  { %v206_v24 = vpop.f32.mrf.mxu1 }
 0x195   :  { %216 = vst.msk [vmem:[#allocation2 + $0x8] sm:$0xff] %vm34_vm0, %v212_v23  ;;  %v207_v25 = vadd.f32 %v236_v21, %v206_v24 }
 0x197   :  { %215 = vst.msk [vmem:[#allocation2] sm:$0xff] %vm34_vm0, %v207_v25 }
 0x198   :  { %299 = shalt.err (!%p296_p4)
}
 0x199   :  { %s311_s24 = smov 128   ;;  %s312_s4 = smov 8  }
 0x19a   :  { %228 = dma.vmem_to_hbm [thread:$0]  %s223_s23, 256, %s403_s5, [#allocation3], %s311_s24, %s311_s24, %s312_s4  }
 0x19b   :  { %308 = dma.done.wait [#allocation3], 256  }
 0x19c   :  { %309 = vsyncadd [#allocation3], 4294967040 }
 0x19d   :  { %232 = vsyncpa [#allocation3], 1 }

</bundles_post_ra>
